<compile_context>
chip_gen: v6e
topology: v6e:2x2x1
jax: 0.10.0
libtpu: 0.0.40
codegen_flags: <defaults>
</compile_context>

<pallas_src>
import jax
import jax.numpy as jnp
from jax.experimental import pallas as pl
from jax.experimental.pallas import tpu as pltpu


# Per-operand, per-tile byte budget.  Double-buffered in+out => ~4x this
# resident in VMEM (~16 MiB).
_TILE_BYTES = 4 * 1024 * 1024
# Safe on every generation: <= 64 MiB v7x physical, << 128 MiB v5e/v6e physical,
# and explicitly above v5e's 16 MiB scoped default.
_VMEM_LIMIT_BYTES = 32 * 1024 * 1024


def _round_up(a: int, b: int) -> int:
    return pl.cdiv(a, b) * b


def _choose_tiles(rows: int, l_out: int, dtype) -> tuple[int, int]:
    """Pick (row_tile, lane_tile) from a VMEM byte budget, lane axis first."""
    itemsize = jnp.dtype(dtype).itemsize
    # Sublane packing: 8 for 32-bit, 16 for 16-bit, 32 for 8-bit dtypes.
    sub = max(8, 32 // max(1, itemsize))
    budget_elems = max(_TILE_BYTES // itemsize, sub * 128)

    # 1) Grow the lane (L) axis first: widest lane-dense tile that fits the
    #    budget with the minimal (one sublane-pack) row tile.
    l_full = _round_up(l_out, 128)
    tl_cap = max(128, (budget_elems // (sub * 128)) * 128)
    tl = min(l_full, tl_cap)

    # 2) Grow the row axis with whatever budget remains.
    r_full = _round_up(rows, sub)
    tr_cap = max(sub, (budget_elems // (tl * sub)) * sub)
    tr = min(r_full, tr_cap)
    return tr, tl


def _chomp_copy_kernel(x_ref, o_ref):
    # Matched (TR, TL) blocks: pure pass-through copy, zero VPU work.
    o_ref[...] = x_ref[...]


def chomp1d(x: jax.Array, chomp_size: int) -> jax.Array:
    """Pallas implementation of Chomp1d.forward for a (N, C, L) array."""
    n, c, l = x.shape
    assert chomp_size >= 0, "chomp_size must be non-negative"
    l_out = l - chomp_size
    if chomp_size == 0 or l_out <= 0:
        # Mirror PyTorch: x[:, :, :-0] (or chomp >= L) -> empty time axis.
        return x[:, :, :0]

    rows = n * c
    x2 = x.reshape(rows, l)  # free: merges leading axes only

    tr, tl = _choose_tiles(rows, l_out, x.dtype)
    grid = (pl.cdiv(rows, tr), pl.cdiv(l_out, tl))
    itemsize = jnp.dtype(x.dtype).itemsize

    out2 = pl.pallas_call(
        _chomp_copy_kernel,
        out_shape=jax.ShapeDtypeStruct((rows, l_out), x.dtype),
        grid_spec=pltpu.PrefetchScalarGridSpec(
            num_scalar_prefetch=0,
            grid=grid,
            # Same block shape & index_map for input and output: block (r, j)
            # covers rows [r*tr, r*tr+tr) and cols [j*tl, j*tl+tl).  Interior
            # L-tiles never read the chomped tail; the ragged last tile is
            # padded on read and masked on write by Pallas.
            in_specs=[pl.BlockSpec((tr, tl), lambda r, j: (r, j))],
            out_specs=pl.BlockSpec((tr, tl), lambda r, j: (r, j)),
        ),
        compiler_params=pltpu.CompilerParams(
            dimension_semantics=("parallel", "parallel"),
            vmem_limit_bytes=_VMEM_LIMIT_BYTES,
        ),
        cost_estimate=pl.CostEstimate(
            flops=0,
            transcendentals=0,
            bytes_accessed=2 * rows * l_out * itemsize,
        ),
    )(x2)

    return out2.reshape(n, c, l_out)


if __name__ == "__main__":
    # Chomp1d has no parameters — only chomp_size from __init__.
    chomp_size = 3

    key = jax.random.PRNGKey(0)
    N, C, L = 2, 4, 16
    x = jax.random.normal(key, (N, C, L), dtype=jnp.float32)

    out = jax.block_until_ready(chomp1d(x, chomp_size))
    ref = x[:, :, :-chomp_size]
    assert out.shape == (N, C, L - chomp_size), out.shape
    assert out.dtype == x.dtype
    assert jnp.array_equal(out, ref), "Pallas Chomp1d mismatch vs reference"

    # Medium f32 shape: ragged L-tile + non-trivial tile-size selection.
    x_med = jax.random.normal(jax.random.PRNGKey(1), (4, 96, 1300), jnp.float32)
    out_med = jax.block_until_ready(chomp1d(x_med, 7))
    assert jnp.array_equal(out_med, x_med[:, :, :-7]), "medium-shape mismatch"

    # Multi-row-tile grid at the full 4 MiB tile budget.
    x_big = jax.random.normal(jax.random.PRNGKey(2), (8, 256, 2050), jnp.float32)
    out_big = jax.block_until_ready(chomp1d(x_big, 2))
    assert jnp.array_equal(out_big, x_big[:, :, :-2]), "big-shape mismatch"

    # bf16 path (dtype-aware sublane packing in tile selection).
    x_bf = jax.random.normal(
        jax.random.PRNGKey(3), (2, 32, 260), jnp.float32
    ).astype(jnp.bfloat16)
    out_bf = jax.block_until_ready(chomp1d(x_bf, 4))
    assert out_bf.dtype == jnp.bfloat16
    assert jnp.array_equal(out_bf, x_bf[:, :, :-4]), "bf16 mismatch"

    # chomp_size == 0 mirrors PyTorch's x[:, :, :-0] -> empty time axis.
    assert chomp1d(x, 0).shape == (N, C, 0)

    print("KERNEL_OK")
</pallas_src>

<mosaic_0001>
module attributes {stable_mosaic.version = 11 : i64} {
  func.func @_chomp_copy_kernel(%arg0: i32, %arg1: i32, %arg2: memref<8x128xf32, #tpu.memory_space<vmem>>, %arg3: memref<8x128xf32, #tpu.memory_space<vmem>>) attributes {dimension_semantics = [#tpu.dimension_semantics<parallel>, #tpu.dimension_semantics<parallel>], iteration_bounds = array<i64: 1, 1>, scalar_prefetch = 0 : i64, scratch_operands = 0 : i64, tpu.core_type = #tpu.core_type<tc>, window_params = [{transform_indices = @transform_0, window_bounds = array<i64: 8, 128>}, {transform_indices = @transform_1, window_bounds = array<i64: 8, 128>}]} {
    %c0 = arith.constant 0 : index
    %c0_0 = arith.constant 0 : index
    %0 = vector.load %arg2[%c0, %c0_0] : memref<8x128xf32, #tpu.memory_space<vmem>>, vector<8x128xf32>
    %c0_1 = arith.constant 0 : index
    %c0_2 = arith.constant 0 : index
    %1 = vector.load %arg3[%c0_1, %c0_2] : memref<8x128xf32, #tpu.memory_space<vmem>>, vector<8x128xf32>
    tpu.vector_store %arg3[%c0_1, %c0_2], %0 {strides = array<i32>} : memref<8x128xf32, #tpu.memory_space<vmem>>, vector<8x128xf32>,
    return
  }
  func.func @transform_0(%arg0: i32, %arg1: i32) -> (i32, i32) {
    %c0_i32 = arith.constant 0 : i32
    return %arg0, %arg1 : i32, i32
  }
  func.func @transform_1(%arg0: i32, %arg1: i32) -> (i32, i32) {
    %c0_i32 = arith.constant 0 : i32
    return %arg0, %arg1 : i32, i32
  }
}

</mosaic_0001>

<bundles_post_ra>
// kernel: tpu_custom_call.1
= control target key start
LH: loop header
LB: loop body
LE: loop exit
PB: predicated region body
PF: predicated region fallthrough
CT: control target
= control target key end

     0   :  { %6 = vsyncpa [#allocation3], 0  ;;  %s102_s0 = inlined_call_operand.hbm [shape: f32[8,16], index: 0, kind: input, shape index: {}]   ;;  %s103_s1 = inlined_call_operand.hbm [shape: f32[8,13], index: 1, kind: output, shape index: {}]  }
   0x1   :  { %7 = vsyncpa [#allocation4], 0  ;;  %s84_s6 = smov [#allocation2]  }
   0x2   :  { %s14_s7 = sshll.u32 %s84_s6, 4  ;;  %s15_s7 = int_to_ptr.vmem [resolvable:$true] %s14_s7 }
   0x3   :  { %s48_s8 = scalar_lea.vmem %s15_s7, 128  ;;  %p53_p1 = scmp.lt.s32.totalorder %s15_s7, %s15_s7 }
   0x4   :  { %p49_p0 = scmp.ne.s32.totalorder %s15_s7, %s48_s8  ;;  %p54_p2 = scmp.lt.s32.totalorder %s48_s8, %s48_s8 }
   0x6   :  { %p55_p3 = por %p54_p2, %p53_p1 }
   0x8   :  { %p56_p4 = pnand %p55_p3, %p49_p0 }
   0xa   :  { %59 = shalt.err (!%p56_p4)
}
   0xb   :  { %17 = dma.hbm_to_vmem [thread:$0]  %s102_s0, 128, %s15_s7, [#allocation3]  }
   0xc   :  { %80 = dma.done.wait [#allocation3], 128  }
   0xd   :  { %81 = vsyncadd [#allocation3], 4294967168  ;;  %s85_s11 = smov [#allocation5]   ;;  %v21_v0 = vld [vmem:[#allocation2] sm:$0xff] }
   0xe   :  { %s29_s12 = sshll.u32 %s85_s11, 4  ;;  %22 = vst [vmem:[#allocation5] sm:$0xff] %v21_v0  ;;  %s30_s12 = int_to_ptr.vmem [resolvable:$true] %s29_s12 }
   0xf   :  { %s60_s13 = scalar_lea.vmem %s30_s12, 128  ;;  %p65_p6 = scmp.lt.s32.totalorder %s30_s12, %s30_s12 }
  0x10   :  { %p61_p5 = scmp.ne.s32.totalorder %s30_s12, %s60_s13  ;;  %p66_p7 = scmp.lt.s32.totalorder %s60_s13, %s60_s13 }
  0x12   :  { %p67_p8 = por %p66_p7, %p65_p6 }
  0x14   :  { %p68_p9 = pnand %p67_p8, %p61_p5 }
  0x16   :  { %71 = shalt.err (!%p68_p9)
}
  0x17   :  { %32 = dma.vmem_to_hbm [thread:$0]  %s30_s12, 128, %s103_s1, [#allocation4]  }
  0x18   :  { %82 = dma.done.wait [#allocation4], 128  }
  0x19   :  { %83 = vsyncadd [#allocation4], 4294967168 }
  0x1a   :  { %36 = vsyncpa [#allocation3], 1 }
  0x1b   :  { %37 = vsyncpa [#allocation4], 1 }

</bundles_post_ra>
